<compile_context>
chip_gen: v7x
topology: tpu7x:2x2x1
jax: 0.10.0
libtpu: 0.0.40
codegen_flags: <defaults>
</compile_context>

<pallas_src>
import functools

import jax
import jax.numpy as jnp
from jax.experimental import pallas as pl
from jax.experimental.pallas import tpu as pltpu


_MAX_IMAGES_PER_STEP = 16      # cap on batch packing (keeps the static unroll small)
_MIN_STEP_BYTES = 1 << 20      # only split tiles further if steps keep >= 1 MiB of x+out


def _cdiv(a, b):
    return -(-a // b)


def _pad8(c):
    """f32 sublane padding: a (C, ts) block occupies pad8(C) sublanes of VMEM."""
    return max(8, _cdiv(c, 8) * 8)


def _vmem_capacity_bytes():
    try:
        cap = int(getattr(pltpu.get_tpu_info(), "vmem_capacity_bytes", 0))
        if cap > 0:
            return cap
    except Exception:
        pass
    return 64 << 20            # conservative (v7x-sized) fallback


def _choose_tiling(N, HW, Cin, Hid, Cout, itemsize, vmem_budget):
    """Pick (nb images per step, spatial tile ts) targeting MiB-scale grid steps.

    per_col = VMEM bytes per packed lane-column: double-buffered x/out streams,
    the f32 hidden activation and one output-sized temporary (sublane-padded).
    """
    cin_p, cout_p, hid_p = _pad8(Cin), _pad8(Cout), _pad8(Hid)
    per_col = (2 * cin_p + 3 * cout_p + 2 * hid_p) * itemsize
    max_cols = max(128, vmem_budget // per_col)

    if HW <= max_cols:
        ts = HW                                            # full-spatial, lane-dense tile
        nb = max(1, min(N, max_cols // HW, _MAX_IMAGES_PER_STEP))
    else:
        nb = 1
        ts = min(HW, max(128, (max_cols // 128) * 128))    # multiple of 128 (lane-dense)

    # Megacore / pipelining: prefer >= 4 grid steps (2 TCs x double buffering on
    # v7x) as long as every step still streams >= _MIN_STEP_BYTES of x+out, so
    # the ~0.35us per-step overhead stays amortized.
    def n_steps(nb_, ts_):
        return _cdiv(N, nb_) * _cdiv(HW, ts_)

    def step_bytes(nb_, ts_):
        return nb_ * ts_ * (Cin + Cout) * itemsize

    while n_steps(nb, ts) < 4:
        if nb > 1 and step_bytes(max(1, nb // 2), ts) >= _MIN_STEP_BYTES:
            nb = max(1, nb // 2)
            continue
        ts_new = max(128, _cdiv(ts // 2, 128) * 128)
        if ts_new < ts and step_bytes(nb, ts_new) >= _MIN_STEP_BYTES:
            ts = ts_new
            continue
        break
    return nb, ts


def _vmem_limit_bytes(nb, ts, Cin, Hid, Cout, itemsize, vmem_cap):
    """Scoped-VMEM limit from the chosen tiling (sublane-padded), with headroom."""
    cin_p, cout_p, hid_p = _pad8(Cin), _pad8(Cout), _pad8(Hid)
    stream = 2 * nb * ts * (cin_p + cout_p) * itemsize          # double-buffered x / out
    act = nb * ts * (2 * hid_p + cout_p) * itemsize             # f32 temporaries
    wgt = 2 * (hid_p * cin_p + cout_p * hid_p + hid_p + cout_p) * itemsize
    est = stream + act + wgt
    limit = int(1.5 * est) + (2 << 20)
    return int(min(vmem_cap - (8 << 20), max(32 << 20, limit)))


def _pw_mlp_kernel(x_ref, w1_ref, b1_ref, w2_ref, b2_ref, o_ref, *, nb):
    """Fused pointwise MLP on a (nb, Cin, ts) block: nb images x ts lane-dense pixels.

    Each image is a clean MXU-layout matmul pair (no lane transposes):
      (Hid, Cin) @ (Cin, ts) -> ReLU6 -> (Cout, Hid) @ (Hid, ts).
    Weights/biases are tiny and their BlockSpecs have constant block indices, so
    they are DMA'd once and stay resident.
    """
    w1 = w1_ref[...]
    b1 = b1_ref[...]
    w2 = w2_ref[...]
    b2 = b2_ref[...]
    for i in range(nb):                      # small static unroll (nb <= _MAX_IMAGES_PER_STEP)
        x = x_ref[i]                         # (Cin, ts), spatial pixels on lanes
        h = jnp.dot(w1, x, preferred_element_type=jnp.float32) + b1
        h = jnp.minimum(jnp.maximum(h, 0.0), 6.0)        # ReLU6; dropout(p=0) == identity
        y = jnp.dot(w2, h, preferred_element_type=jnp.float32) + b2
        o_ref[i] = y.astype(o_ref.dtype)


@jax.jit
def pw_mlp_forward(x_nchw, w1, b1, w2, b2):
    """x_nchw: (N, Cin, H, W); w1: (Hid, Cin); b1: (Hid,); w2: (Cout, Hid); b2: (Cout,)."""
    N, Cin, H, W = x_nchw.shape
    HW = H * W
    Hid = w1.shape[0]
    Cout = w2.shape[0]
    itemsize = x_nchw.dtype.itemsize

    vmem_cap = _vmem_capacity_bytes()
    vmem_budget = min(max(16 << 20, vmem_cap // 2 - (4 << 20)), 80 << 20)
    nb, ts = _choose_tiling(N, HW, Cin, Hid, Cout, itemsize, vmem_budget)

    # Free reshape (contiguous trailing dims merge) — no transpose / pad / slice;
    # the spatial axis lands on lanes so all loads & stores are lane-dense.
    x3 = x_nchw.reshape(N, Cin, HW)
    b1_2d = b1.reshape(Hid, 1)
    b2_2d = b2.reshape(Cout, 1)

    grid = (_cdiv(N, nb), _cdiv(HW, ts))     # ragged edges handled by Pallas (clipped DMA)

    out3 = pl.pallas_call(
        functools.partial(_pw_mlp_kernel, nb=nb),
        out_shape=jax.ShapeDtypeStruct((N, Cout, HW), x_nchw.dtype),
        grid_spec=pl.GridSpec(
            grid=grid,
            in_specs=[
                pl.BlockSpec((nb, Cin, ts), lambda n, s: (n, 0, s)),
                pl.BlockSpec((Hid, Cin), lambda n, s: (0, 0)),
                pl.BlockSpec((Hid, 1), lambda n, s: (0, 0)),
                pl.BlockSpec((Cout, Hid), lambda n, s: (0, 0)),
                pl.BlockSpec((Cout, 1), lambda n, s: (0, 0)),
            ],
            out_specs=pl.BlockSpec((nb, Cout, ts), lambda n, s: (n, 0, s)),
        ),
        compiler_params=pltpu.CompilerParams(
            dimension_semantics=("parallel", "parallel"),
            vmem_limit_bytes=_vmem_limit_bytes(nb, ts, Cin, Hid, Cout, itemsize, vmem_cap),
        ),
    )(x3, w1, b1_2d, w2, b2_2d)

    return out3.reshape(N, Cout, H, W)


def init_mlp_params(key, in_features, hidden_features, out_features, dtype=jnp.float32):
    """Deterministic init matching nn.Conv2d(k=1) parameter shapes.

    Conv2d weight (out, in, 1, 1) collapses to (out, in) for a 1x1 conv; uses
    kaiming-uniform-like bounds (as PyTorch does) with fixed PRNG keys.
    """
    k1, k2, k3, k4 = jax.random.split(key, 4)
    bound1 = 1.0 / (in_features ** 0.5)
    bound2 = 1.0 / (hidden_features ** 0.5)
    w1 = jax.random.uniform(k1, (hidden_features, in_features), dtype, -bound1, bound1)
    b1 = jax.random.uniform(k2, (hidden_features,), dtype, -bound1, bound1)
    w2 = jax.random.uniform(k3, (out_features, hidden_features), dtype, -bound2, bound2)
    b2 = jax.random.uniform(k4, (out_features,), dtype, -bound2, bound2)
    return w1, b1, w2, b2


def pw_mlp_reference(x_nchw, w1, b1, w2, b2):
    """Pure-JAX reference of the forward (1x1 convs as einsum)."""
    h = jnp.einsum("nchw,oc->nohw", x_nchw, w1) + b1[None, :, None, None]
    h = jnp.minimum(jnp.maximum(h, 0.0), 6.0)
    y = jnp.einsum("nchw,oc->nohw", h, w2) + b2[None, :, None, None]
    return y


if __name__ == "__main__":
    key = jax.random.PRNGKey(0)
    kx, kp = jax.random.split(key)

    N, Cin, H, W = 2, 4, 16, 16
    hidden = 32
    Cout = Cin  # out_features defaults to in_features

    x = jax.random.normal(kx, (N, Cin, H, W), jnp.float32)
    w1, b1, w2, b2 = init_mlp_params(kp, Cin, hidden, Cout)

    out = pw_mlp_forward(x, w1, b1, w2, b2)
    out = jax.block_until_ready(out)

    ref = pw_mlp_reference(x, w1, b1, w2, b2)
    assert out.shape == (N, Cout, H, W), out.shape
    assert jnp.allclose(out, ref, atol=1e-5, rtol=1e-5), "mismatch vs reference"

    print("KERNEL_OK")
</pallas_src>

<mosaic_0001>
module attributes {stable_mosaic.version = 11 : i64} {
  func.func @_pw_mlp_kernel(%arg0: i32, %arg1: i32, %arg2: memref<2x4x256xf32, #tpu.memory_space<vmem>>, %arg3: memref<32x4xf32, #tpu.memory_space<vmem>>, %arg4: memref<32x1xf32, #tpu.memory_space<vmem>>, %arg5: memref<4x32xf32, #tpu.memory_space<vmem>>, %arg6: memref<4x1xf32, #tpu.memory_space<vmem>>, %arg7: memref<2x4x256xf32, #tpu.memory_space<vmem>>) attributes {dimension_semantics = [#tpu.dimension_semantics<parallel>, #tpu.dimension_semantics<parallel>], iteration_bounds = array<i64: 1, 1>, scalar_prefetch = 0 : i64, scratch_operands = 0 : i64, tpu.core_type = #tpu.core_type<tc>, window_params = [{transform_indices = @transform_0, window_bounds = array<i64: 2, 4, 256>}, {pipeline_mode = #tpu.pipeline_mode<synchronous>, transform_indices = @transform_1, window_bounds = array<i64: 32, 4>}, {pipeline_mode = #tpu.pipeline_mode<synchronous>, transform_indices = @transform_2, window_bounds = array<i64: 32, 1>}, {pipeline_mode = #tpu.pipeline_mode<synchronous>, transform_indices = @transform_3, window_bounds = array<i64: 4, 32>}, {pipeline_mode = #tpu.pipeline_mode<synchronous>, transform_indices = @transform_4, window_bounds = array<i64: 4, 1>}, {transform_indices = @transform_5, window_bounds = array<i64: 2, 4, 256>}]} {
    %c0 = arith.constant 0 : index
    %c0_0 = arith.constant 0 : index
    %0 = vector.load %arg3[%c0, %c0_0] : memref<32x4xf32, #tpu.memory_space<vmem>>, vector<32x4xf32>
    %c0_1 = arith.constant 0 : index
    %c0_2 = arith.constant 0 : index
    %1 = vector.load %arg4[%c0_1, %c0_2] : memref<32x1xf32, #tpu.memory_space<vmem>>, vector<32x1xf32>
    %c0_3 = arith.constant 0 : index
    %c0_4 = arith.constant 0 : index
    %2 = vector.load %arg5[%c0_3, %c0_4] : memref<4x32xf32, #tpu.memory_space<vmem>>, vector<4x32xf32>
    %c0_5 = arith.constant 0 : index
    %c0_6 = arith.constant 0 : index
    %3 = vector.load %arg6[%c0_5, %c0_6] : memref<4x1xf32, #tpu.memory_space<vmem>>, vector<4x1xf32>
    %c0_7 = arith.constant 0 : index
    %c0_8 = arith.constant 0 : index
    %c0_9 = arith.constant 0 : index
    %4 = vector.load %arg2[%c0_7, %c0_8, %c0_9] : memref<2x4x256xf32, #tpu.memory_space<vmem>>, vector<1x4x256xf32>
    %5 = vector.shape_cast %4 : vector<1x4x256xf32> to vector<4x256xf32>
    %cst = arith.constant dense<0.000000e+00> : vector<32x256xf32>
    %6 = tpu.matmul %0, %5, %cst {dimension_numbers = #tpu.dot_dimension_numbers<[1], [0], [0], [1], [0, 0, 1, 1], [], []>} : vector<32x4xf32>, vector<4x256xf32>, vector<32x256xf32> -> vector<32x256xf32>
    %7 = vector.broadcast %1 : vector<32x1xf32> to vector<32x256xf32>
    %8 = arith.addf %6, %7 : vector<32x256xf32>
    %cst_10 = arith.constant 0.000000e+00 : f32
    %9 = vector.broadcast %cst_10 : f32 to vector<32x256xf32>
    %10 = arith.maximumf %8, %9 : vector<32x256xf32>
    %cst_11 = arith.constant 6.000000e+00 : f32
    %11 = vector.broadcast %cst_11 : f32 to vector<32x256xf32>
    %12 = arith.minimumf %10, %11 : vector<32x256xf32>
    %cst_12 = arith.constant dense<0.000000e+00> : vector<4x256xf32>
    %13 = tpu.matmul %2, %12, %cst_12 {dimension_numbers = #tpu.dot_dimension_numbers<[1], [0], [0], [1], [0, 0, 1, 1], [], []>} : vector<4x32xf32>, vector<32x256xf32>, vector<4x256xf32> -> vector<4x256xf32>
    %14 = vector.broadcast %3 : vector<4x1xf32> to vector<4x256xf32>
    %15 = arith.addf %13, %14 : vector<4x256xf32>
    %c0_13 = arith.constant 0 : index
    %c0_14 = arith.constant 0 : index
    %c0_15 = arith.constant 0 : index
    %16 = vector.load %arg7[%c0_13, %c0_14, %c0_15] : memref<2x4x256xf32, #tpu.memory_space<vmem>>, vector<1x4x256xf32>
    %17 = vector.shape_cast %16 : vector<1x4x256xf32> to vector<4x256xf32>
    %18 = vector.shape_cast %15 : vector<4x256xf32> to vector<1x4x256xf32>
    tpu.vector_store %arg7[%c0_13, %c0_14, %c0_15], %18 {strides = array<i32>} : memref<2x4x256xf32, #tpu.memory_space<vmem>>, vector<1x4x256xf32>,
    %c1 = arith.constant 1 : index
    %c0_16 = arith.constant 0 : index
    %c0_17 = arith.constant 0 : index
    %19 = vector.load %arg2[%c1, %c0_16, %c0_17] : memref<2x4x256xf32, #tpu.memory_space<vmem>>, vector<1x4x256xf32>
    %20 = vector.shape_cast %19 : vector<1x4x256xf32> to vector<4x256xf32>
    %cst_18 = arith.constant dense<0.000000e+00> : vector<32x256xf32>
    %21 = tpu.matmul %0, %20, %cst_18 {dimension_numbers = #tpu.dot_dimension_numbers<[1], [0], [0], [1], [0, 0, 1, 1], [], []>} : vector<32x4xf32>, vector<4x256xf32>, vector<32x256xf32> -> vector<32x256xf32>
    %22 = vector.broadcast %1 : vector<32x1xf32> to vector<32x256xf32>
    %23 = arith.addf %21, %22 : vector<32x256xf32>
    %cst_19 = arith.constant 0.000000e+00 : f32
    %24 = vector.broadcast %cst_19 : f32 to vector<32x256xf32>
    %25 = arith.maximumf %23, %24 : vector<32x256xf32>
    %cst_20 = arith.constant 6.000000e+00 : f32
    %26 = vector.broadcast %cst_20 : f32 to vector<32x256xf32>
    %27 = arith.minimumf %25, %26 : vector<32x256xf32>
    %cst_21 = arith.constant dense<0.000000e+00> : vector<4x256xf32>
    %28 = tpu.matmul %2, %27, %cst_21 {dimension_numbers = #tpu.dot_dimension_numbers<[1], [0], [0], [1], [0, 0, 1, 1], [], []>} : vector<4x32xf32>, vector<32x256xf32>, vector<4x256xf32> -> vector<4x256xf32>
    %29 = vector.broadcast %3 : vector<4x1xf32> to vector<4x256xf32>
    %30 = arith.addf %28, %29 : vector<4x256xf32>
    %c1_22 = arith.constant 1 : index
    %c0_23 = arith.constant 0 : index
    %c0_24 = arith.constant 0 : index
    %31 = vector.load %arg7[%c1_22, %c0_23, %c0_24] : memref<2x4x256xf32, #tpu.memory_space<vmem>>, vector<1x4x256xf32>
    %32 = vector.shape_cast %31 : vector<1x4x256xf32> to vector<4x256xf32>
    %33 = vector.shape_cast %30 : vector<4x256xf32> to vector<1x4x256xf32>
    tpu.vector_store %arg7[%c1_22, %c0_23, %c0_24], %33 {strides = array<i32>} : memref<2x4x256xf32, #tpu.memory_space<vmem>>, vector<1x4x256xf32>,
    return
  }
  func.func @transform_0(%arg0: i32, %arg1: i32) -> (i32, i32, i32) {
    %c0_i32 = arith.constant 0 : i32
    %c0_i32_0 = arith.constant 0 : i32
    return %arg0, %c0_i32, %arg1 : i32, i32, i32
  }
  func.func @transform_1(%arg0: i32, %arg1: i32) -> (i32, i32) {
    %c0_i32 = arith.constant 0 : i32
    %c0_i32_0 = arith.constant 0 : i32
    %c0_i32_1 = arith.constant 0 : i32
    return %c0_i32, %c0_i32_0 : i32, i32
  }
  func.func @transform_2(%arg0: i32, %arg1: i32) -> (i32, i32) {
    %c0_i32 = arith.constant 0 : i32
    %c0_i32_0 = arith.constant 0 : i32
    %c0_i32_1 = arith.constant 0 : i32
    return %c0_i32, %c0_i32_0 : i32, i32
  }
  func.func @transform_3(%arg0: i32, %arg1: i32) -> (i32, i32) {
    %c0_i32 = arith.constant 0 : i32
    %c0_i32_0 = arith.constant 0 : i32
    %c0_i32_1 = arith.constant 0 : i32
    return %c0_i32, %c0_i32_0 : i32, i32
  }
  func.func @transform_4(%arg0: i32, %arg1: i32) -> (i32, i32) {
    %c0_i32 = arith.constant 0 : i32
    %c0_i32_0 = arith.constant 0 : i32
    %c0_i32_1 = arith.constant 0 : i32
    return %c0_i32, %c0_i32_0 : i32, i32
  }
  func.func @transform_5(%arg0: i32, %arg1: i32) -> (i32, i32, i32) {
    %c0_i32 = arith.constant 0 : i32
    %c0_i32_0 = arith.constant 0 : i32
    return %arg0, %c0_i32, %arg1 : i32, i32, i32
  }
}

</mosaic_0001>

<bundles_post_ra>
// kernel: pw_mlp_forward.1
= control target key start
LH: loop header
LB: loop body
LE: loop exit
PB: predicated region body
PF: predicated region fallthrough
CT: control target
= control target key end

     0   :  { %vm66_vm0 = vcmask 1043456   ;;  %v493_v1 = vmov 0.0   ;;  %v494_v2 = vmov 0   ;;  %vm53_vm1 = vcmask 31744   ;;  %s627_s0 = inlined_call_operand.vmem [shape: f32[2,4,256], index: 0, kind: input, shape index: {}]   ;;  %s628_s1 = inlined_call_operand.vmem [shape: f32[32,4], index: 1, kind: input, shape index: {}]   ;;  %s629_s2 = inlined_call_operand.vmem [shape: f32[32,1], index: 2, kind: input, shape index: {}]   ;;  %s630_s4 = inlined_call_operand.vmem [shape: f32[4,1], index: 4, kind: input, shape index: {}]   ;;  %s631_s3 = inlined_call_operand.vmem [shape: f32[4,32], index: 3, kind: input, shape index: {}]   ;;  %s632_s5 = inlined_call_operand.vmem [shape: f32[2,4,256], index: 5, kind: output, shape index: {}]  }
   0x1   :  { %v30_v0 = vld [vmem:[%s627_s0] sm:$0xff]  ;;  %135 = vmatprep.mubr.f32.mxu0 %v493_v1  ;;  %489 = vset.pattern.permute.xlu0 %v494_v2  ;;  %v26_v6 = vld [vmem:[%s629_s2 + $0x10] sm:$0xff]  ;;  %v25_v7 = vld [vmem:[%s629_s2 + $0x8] sm:$0xff]  ;;  %vm181_vm2 = vcmask 261120  }
   0x2   :  { %v52_v3 = vcombine.high %v30_v0, %v30_v0  ;;  %490 = vset.pattern.permute.xlu1 %v494_v2  ;;  %249 = vmatprep.mubr.f32.mxu1 %v493_v1  ;;  %v533_v4 = vld [vmem:[%s628_s1] sm:$0xff]  ;;  %v27_v8 = vld [vmem:[%s629_s2 + $0x18] sm:$0xff]  ;;  %v555_v9 = vld [vmem:[%s628_s1 + $0x8] sm:$0xff] }
   0x3   :  { %v24_v5 = vld [vmem:[%s629_s2] sm:$0xff]  ;;  %43 = vperm.xlu1 %490, %v26_v6   ;;  %v566_v11 = vld [vmem:[%s628_s1 + $0x10] sm:$0xff]  ;;  %v23_v12 = vld [vmem:[%s628_s1 + $0x18] sm:$0xff] }
   0x4   :  { %455 = vmatprep.subr.msk.mxu0 %vm66_vm0, %v52_v3  ;;  %33 = vperm.xlu0 %489, %v24_v5   ;;  %v29_v10 = vld [vmem:[%s630_s4] sm:$0xf]  ;;  %v462_v47 = vld [vmem:[%s627_s0 + $0x8] sm:$0xff] }
   0x5   :  { %456 = vmatpush1.msk.msra.mxu0 %vm66_vm0, %v30_v0  ;;  %v264_v53 = vcombine.high %v462_v47, %v462_v47  ;;  %v28_v55 = vld [vmem:[%s631_s3] sm:$0xf] }
   0x6   :  { %457 = vmatmul.mubr.msk.f32.vlgmr.msra.gmra.mrb[0].mxu0 %vm53_vm1, %v533_v4 }
   0x7   :  { %141 = vmatprep.mubr.f32.mxu0 %v493_v1  ;;  %48 = vperm.xlu1 %490, %v27_v8  }
   0x8   :  { %38 = vperm.xlu0 %489, %v25_v7  }
   0xa   :  { %458 = vmatmul.mubr.msk.f32.gmra.mrb[2].mxu0 %vm53_vm1, %v555_v9 }
   0xb   :  { %147 = vmatprep.mubr.f32.mxu0 %v493_v1 }
   0xc   :  { %178 = vperm.xlu0 %489, %v29_v10  }
   0xe   :  { %459 = vmatmul.mubr.msk.f32.gmra.mrb[4].mxu0 %vm53_vm1, %v566_v11 }
   0xf   :  { %153 = vmatprep.mubr.f32.mxu0 %v493_v1 }
  0x12   :  { %460 = vmatmul.mubr.msk.f32.gmra.mrb[6].mxu0 %vm53_vm1, %v23_v12 }
  0x13   :  { %438 = vmatprep.mubr.f32.mxu0 %v493_v1 }
  0x82   :  { %v583_v24 = vpop.permute.xlu1 %43 }
  0x83   :  { %v576_v13 = vpop.permute.xlu0 %33 }
  0x86   :  { %v588_v37 = vpop.permute.xlu1 %48 }
  0x87   :  { %v580_v18 = vpop.permute.xlu0 %38 }
  0x8b   :  { %v179_v56 = vpop.permute.xlu0 %178 }
  0xd9   :  { %v137_v14 = vpop.f32.mrb[0].mxu0 }
  0xda   :  { %v138_v15 = vadd.f32 %v137_v14, %v576_v13  ;;  %v139_v16 = vpop.f32.mrb[1].mxu0 }
  0xdb   :  { %v140_v17 = vadd.f32 %v139_v16, %v576_v13 }
  0xdc   :  { %v160_v20 = vmax.f32 %v138_v15, 0.0 }
  0xdd   :  { %v143_v19 = vpop.f32.mrb[2].mxu0  ;;  %v161_v23 = vmax.f32 %v140_v17, 0.0 }
  0xde   :  { %v144_v21 = vadd.f32 %v143_v19, %v580_v18  ;;  %v145_v22 = vpop.f32.mrb[3].mxu0  ;;  %v168_v29 = vmin.f32 %v160_v20, 6.0 }
  0xdf   :  { %v146_v25 = vadd.f32 %v145_v22, %v580_v18  ;;  %v169_v33 = vmin.f32 %v161_v23, 6.0 }
  0xe0   :  { %v162_v26 = vmax.f32 %v144_v21, 0.0 }
  0xe1   :  { %v163_v27 = vmax.f32 %v146_v25, 0.0  ;;  %v149_v28 = vpop.f32.mrb[4].mxu0 }
  0xe2   :  { %v170_v30 = vmin.f32 %v162_v26, 6.0  ;;  %v150_v31 = vadd.f32 %v149_v28, %v583_v24  ;;  %v151_v32 = vpop.f32.mrb[5].mxu0 }
  0xe3   :  { %v171_v34 = vmin.f32 %v163_v27, 6.0  ;;  %v152_v35 = vadd.f32 %v151_v32, %v583_v24 }
  0xe4   :  { %v473_v36 = vpack.c.bf16 %v170_v30, %v168_v29  ;;  %v164_v40 = vmax.f32 %v150_v31, 0.0 }
  0xe5   :  { %v155_v38 = vpop.f32.mrb[6].mxu0  ;;  %v471_v39 = vpack.c.bf16 %v171_v34, %v169_v33  ;;  %v165_v43 = vmax.f32 %v152_v35, 0.0 }
  0xe6   :  { %v156_v41 = vadd.f32 %v155_v38, %v588_v37  ;;  %v157_v42 = vpop.f32.mrb[7].mxu0  ;;  %v172_v48 = vmin.f32 %v164_v40, 6.0 }
  0xe7   :  { %v158_v44 = vadd.f32 %v157_v42, %v588_v37  ;;  %472 = vmatprep.subr.bf16.mxu1 %v471_v39  ;;  %v173_v50 = vmin.f32 %v165_v43, 6.0 }
  0xe8   :  { %v166_v45 = vmax.f32 %v156_v41, 0.0  ;;  %474 = vmatpush1.bf16.msra.mxu1 %v473_v36 }
  0xe9   :  { %v167_v46 = vmax.f32 %v158_v44, 0.0 }
  0xea   :  { %v174_v49 = vmin.f32 %v166_v45, 6.0 }
  0xeb   :  { %v175_v51 = vmin.f32 %v167_v46, 6.0 }
  0xec   :  { %v477_v52 = vpack.c.bf16 %v174_v49, %v172_v48 }
  0xed   :  { %v475_v54 = vpack.c.bf16 %v175_v51, %v173_v50 }
  0xef   :  { %476 = vmatprep.subr.bf16.mxu1 %v475_v54 }
  0xf0   :  { %478 = vmatpush1.bf16.msra.mxu1 %v477_v52 }
  0xf1   :  { %463 = vmatprep.subr.msk.mxu1 %vm66_vm0, %v264_v53 }
  0xf3   :  { %461 = vmatmul.mubr.msk.f32.vlgmr.msra.gmra.mrb[0].mxu1 %vm181_vm2, %v28_v55 }
  0xf4   :  { %464 = vmatpush1.msk.msra.mxu1 %vm66_vm0, %v462_v47  ;;  %333 = vmatprep.mubr.f32.mxu1 %v493_v1 }
  0xf7   :  { %465 = vmatmul.mubr.msk.f32.vlgmr.msra.gmra.mrb[2].mxu1 %vm53_vm1, %v533_v4 }
  0xf8   :  { %339 = vmatprep.mubr.f32.mxu1 %v493_v1 }
  0xfb   :  { %466 = vmatmul.mubr.msk.f32.gmra.mrb[4].mxu1 %vm53_vm1, %v555_v9 }
  0xfc   :  { %345 = vmatprep.mubr.f32.mxu1 %v493_v1 }
  0xff   :  { %467 = vmatmul.mubr.msk.f32.gmra.mrb[6].mxu1 %vm53_vm1, %v566_v11 }
 0x100   :  { %351 = vmatprep.mubr.f32.mxu1 %v493_v1 }
 0x103   :  { %468 = vmatmul.mubr.msk.f32.gmra.mrb[8].mxu1 %vm53_vm1, %v23_v12 }
 0x1c6   :  { %v251_v57 = vpop.f32.mrb[0].mxu1 }
 0x1c7   :  { %v252_v58 = vadd.f32 %v251_v57, %v179_v56  ;;  %v253_v59 = vpop.f32.mrb[1].mxu1 }
 0x1c8   :  { %v254_v60 = vadd.f32 %v253_v59, %v179_v56 }
 0x1ca   :  { %v258_v61 = vcombine.low %v252_v58, %v254_v60  ;;  %v335_v62 = vpop.f32.mrb[2].mxu1 }
 0x1cb   :  { %v336_v63 = vadd.f32 %v335_v62, %v576_v13  ;;  %v337_v0 = vpop.f32.mrb[3].mxu1 }
 0x1cc   :  { %260 = vst [vmem:[%s632_s5] sm:$0xff] %v258_v61  ;;  %v338_v2 = vadd.f32 %v337_v0, %v576_v13 }
 0x1cd   :  { %v358_v1 = vmax.f32 %v336_v63, 0.0 }
 0x1ce   :  { %v341_v3 = vpop.f32.mrb[4].mxu1  ;;  %v359_v6 = vmax.f32 %v338_v2, 0.0 }
 0x1cf   :  { %v342_v4 = vadd.f32 %v341_v3, %v580_v18  ;;  %v343_v5 = vpop.f32.mrb[5].mxu1  ;;  %v366_v11 = vmin.f32 %v358_v1, 6.0 }
 0x1d0   :  { %v344_v7 = vadd.f32 %v343_v5, %v580_v18  ;;  %v367_v16 = vmin.f32 %v359_v6, 6.0 }
 0x1d1   :  { %v360_v8 = vmax.f32 %v342_v4, 0.0 }
 0x1d2   :  { %v361_v9 = vmax.f32 %v344_v7, 0.0  ;;  %v347_v10 = vpop.f32.mrb[6].mxu1 }
 0x1d3   :  { %v368_v12 = vmin.f32 %v360_v8, 6.0  ;;  %v348_v14 = vadd.f32 %v347_v10, %v583_v24  ;;  %v349_v15 = vpop.f32.mrb[7].mxu1 }
 0x1d4   :  { %v369_v17 = vmin.f32 %v361_v9, 6.0  ;;  %v350_v13 = vadd.f32 %v349_v15, %v583_v24 }
 0x1d5   :  { %v481_v19 = vpack.c.bf16 %v368_v12, %v366_v11  ;;  %v362_v22 = vmax.f32 %v348_v14, 0.0 }
 0x1d6   :  { %v479_v20 = vpack.c.bf16 %v369_v17, %v367_v16  ;;  %v353_v21 = vpop.f32.mrb[8].mxu1  ;;  %v363_v18 = vmax.f32 %v350_v13, 0.0 }
 0x1d7   :  { %v354_v23 = vadd.f32 %v353_v21, %v588_v37  ;;  %v355_v25 = vpop.f32.mrb[9].mxu1  ;;  %v370_v29 = vmin.f32 %v362_v22, 6.0 }
 0x1d8   :  { %v356_v26 = vadd.f32 %v355_v25, %v588_v37  ;;  %480 = vmatprep.subr.bf16.mxu0 %v479_v20  ;;  %v371_v31 = vmin.f32 %v363_v18, 6.0 }
 0x1d9   :  { %v364_v27 = vmax.f32 %v354_v23, 0.0  ;;  %482 = vmatpush1.bf16.msra.mxu0 %v481_v19 }
 0x1da   :  { %v365_v28 = vmax.f32 %v356_v26, 0.0 }
 0x1db   :  { %v372_v30 = vmin.f32 %v364_v27, 6.0 }
 0x1dc   :  { %v373_v32 = vmin.f32 %v365_v28, 6.0 }
 0x1dd   :  { %v485_v33 = vpack.c.bf16 %v372_v30, %v370_v29 }
 0x1de   :  { %v483_v24 = vpack.c.bf16 %v373_v32, %v371_v31 }
 0x1e0   :  { %484 = vmatprep.subr.bf16.mxu0 %v483_v24 }
 0x1e1   :  { %486 = vmatpush1.bf16.msra.mxu0 %v485_v33 }
 0x1e4   :  { %469 = vmatmul.mubr.msk.f32.vlgmr.msra.gmra.mrb[8].mxu0 %vm181_vm2, %v28_v55 }
 0x2b7   :  { %v440_v34 = vpop.f32.mrb[8].mxu0 }
 0x2b8   :  { %v441_v35 = vadd.f32 %v440_v34, %v179_v56  ;;  %v442_v36 = vpop.f32.mrb[9].mxu0 }
 0x2b9   :  { %v443_v38 = vadd.f32 %v442_v36, %v179_v56 }
 0x2bb   :  { %v447_v39 = vcombine.low %v441_v35, %v443_v38 }
 0x2bd   :  { %470 = vst [vmem:[%s632_s5 + $0x8] sm:$0xff] %v447_v39 }

</bundles_post_ra>
